<compile_context>
chip_gen: v5e
topology: v5e:2x2
jax: 0.10.0
libtpu: 0.0.40
codegen_flags: <defaults>
</compile_context>

<pallas_src>
import jax
import jax.numpy as jnp
from jax.experimental import pallas as pl
from jax.experimental.pallas import tpu as pltpu


def _round_up(x, m):
    return ((x + m - 1) // m) * m


def _decoder_kernel(w_ref, e_ref, o_ref):
    # o[c, n_tile] = sum_d W[c, d] * E[d, n_tile]  -- canonical MXU matmul,
    # f32 accumulation regardless of input dtype.
    o_ref[...] = jnp.dot(
        w_ref[...], e_ref[...], preferred_element_type=jnp.float32
    ).astype(o_ref.dtype)


def _choose_tile_n(n128, D, C, e_itemsize,
                   target_tile_bytes=2 << 20, vmem_budget_bytes=24 << 20):
    """Pick the node-tile (lane) width.

    - ~target_tile_bytes per embedding tile so the ~0.35us per-grid-step
      overhead is amortized (review item #1).
    - Double-buffered (E-in + f32-out) footprint capped at vmem_budget_bytes
      so the same tile is safe on v7x's smaller VMEM (review item #2).
    - >=2 grid steps whenever the problem spans >=2 lane tiles, so the
      "parallel" grid axis can shard across v7x's 2 TensorCores (item #3).
    """
    d_sub = _round_up(D, 8)
    c_sub = _round_up(C, 8)

    tile_n = max(128, (target_tile_bytes // (d_sub * e_itemsize)) // 128 * 128)

    per_lane = 2 * (d_sub * e_itemsize + c_sub * 4)      # double-buffered bytes/lane
    tile_n = min(tile_n, max(128, (vmem_budget_bytes // per_lane) // 128 * 128))

    tile_n = min(tile_n, n128)

    if n128 >= 256:                                      # keep >=2 grid tiles
        tile_n = min(tile_n, _round_up(-(-n128 // 2), 128))
    return tile_n


def stc_decoder_forward_cn(weight, embeddings, *, compute_dtype=None,
                           target_tile_bytes=2 << 20,
                           vmem_budget_bytes=24 << 20):
    """weight: (C, D), embeddings: (D, N)  ->  (C, N) float32 (no transpose)."""
    if compute_dtype is not None:
        # Numerics-gated: bf16 inputs halve the dominant HBM read; the dot
        # still accumulates in f32.
        weight = weight.astype(compute_dtype)
        embeddings = embeddings.astype(compute_dtype)

    C, D = weight.shape
    D2, N = embeddings.shape
    assert D == D2

    # Only pad when the whole tensor has fewer than 128 node-columns (cost is
    # negligible there); otherwise rely on Pallas ragged-last-block handling
    # instead of materializing a padded copy of the dominant (D, N) tensor.
    if N < 128:
        embeddings = jnp.pad(embeddings, ((0, 0), (0, 128 - N)))
        n_cols = 128
    else:
        n_cols = N

    n128 = _round_up(n_cols, 128)
    e_item = embeddings.dtype.itemsize
    w_item = weight.dtype.itemsize
    tile_n = _choose_tile_n(n128, D, C, e_item,
                            target_tile_bytes=target_tile_bytes,
                            vmem_budget_bytes=vmem_budget_bytes)

    grid = (pl.cdiv(n_cols, tile_n),)

    # Explicit scoped-VMEM budget: computed double-buffered footprint plus
    # headroom (covers v5e's 16 MiB default; stays well under v7x's 64 MiB).
    c_sub = _round_up(C, 8)
    d_sub = _round_up(D, 8)
    w_vmem = c_sub * _round_up(D, 128) * w_item
    e_vmem = d_sub * tile_n * e_item
    o_vmem = c_sub * tile_n * 4
    need = 2 * (w_vmem + e_vmem + o_vmem)
    vmem_limit = int(min(48 << 20, max(need + (4 << 20), 16 << 20)))

    out_cn = pl.pallas_call(
        _decoder_kernel,
        out_shape=jax.ShapeDtypeStruct((C, n_cols), jnp.float32),
        grid_spec=pltpu.PrefetchScalarGridSpec(
            num_scalar_prefetch=0,
            grid=grid,
            in_specs=[
                # Weight is tiny (C x D) and resident across the whole grid.
                pl.BlockSpec((C, D), lambda i: (0, 0)),
                # Embedding tile: full D, tile_n node lanes.
                # (If a profile ever shows exposed DMA, add
                #  pipeline_mode=pl.Buffered(3) here -- not on v7x blindly.)
                pl.BlockSpec((D, tile_n), lambda i: (0, i)),
            ],
            # Output tile (C, tile_n): node axis on lanes -> unmasked stores.
            out_specs=pl.BlockSpec((C, tile_n), lambda i: (0, i)),
        ),
        compiler_params=pltpu.CompilerParams(
            dimension_semantics=("parallel",),
            vmem_limit_bytes=vmem_limit,
        ),
        cost_estimate=pl.CostEstimate(
            flops=2 * C * D * N,
            transcendentals=0,
            bytes_accessed=w_item * C * D + e_item * D * N + 4 * C * N,
        ),
    )(weight, embeddings)

    return out_cn[:, :N]


def stc_decoder_forward(weight, embeddings, **kwargs):
    """Module-faithful output: (num_nodes, num_classes).

    The transpose is an extra HBM pass on a bandwidth-bound op; consumers that
    can accept class-major data should call stc_decoder_forward_cn instead.
    """
    return stc_decoder_forward_cn(weight, embeddings, **kwargs).T


def xavier_uniform(key, shape):
    # Matches torch.nn.init.xavier_uniform_ for a 2-D tensor (fan_out, fan_in).
    fan_out, fan_in = shape
    bound = (6.0 / (fan_in + fan_out)) ** 0.5
    return jax.random.uniform(key, shape, jnp.float32, -bound, bound)


def stub_stc_encoder(embed_table, nodes):
    # Stand-in encoder producing (embedding_dim, num_nodes), the layout the
    # PyTorch decoder consumes with weight.mm(embeddings).
    # TODO(synk): replace with the real STC_encoder and fuse its gather into
    # the kernel (scalar-prefetched node ids) to avoid this HBM intermediate.
    return embed_table[nodes].T  # (D, N)


if __name__ == "__main__":
    num_classes = 8
    embedding_dim = 32
    num_nodes = 16
    vocab = 64

    key = jax.random.PRNGKey(0)
    k_w, k_tbl, k_nodes = jax.random.split(key, 3)

    weight = xavier_uniform(k_w, (num_classes, embedding_dim))        # (C, D)
    embed_table = jax.random.normal(k_tbl, (vocab, embedding_dim),
                                    dtype=jnp.float32)                # (V, D)
    nodes = jax.random.randint(k_nodes, (num_nodes,), 0, vocab)       # (N,)

    embeddings = stub_stc_encoder(embed_table, nodes)                 # (D, N)

    out = stc_decoder_forward(weight, embeddings)                     # (N, C)
    out = jax.block_until_ready(out)

    # Reference check (same math as weight.mm(embeddings).t()).
    ref = (weight @ embeddings).T
    assert out.shape == (num_nodes, num_classes)
    assert jnp.allclose(out, ref, atol=1e-5, rtol=1e-5)

    print("KERNEL_OK")
</pallas_src>

<mosaic_0001>
module attributes {stable_mosaic.version = 11 : i64} {
  func.func @_decoder_kernel(%arg0: i32, %arg1: memref<8x32xf32, #tpu.memory_space<vmem>>, %arg2: memref<32x128xf32, #tpu.memory_space<vmem>>, %arg3: memref<8x128xf32, #tpu.memory_space<vmem>>) attributes {dimension_semantics = [#tpu.dimension_semantics<parallel>], iteration_bounds = array<i64: 1>, scalar_prefetch = 0 : i64, scratch_operands = 0 : i64, tpu.core_type = #tpu.core_type<tc>, window_params = [{pipeline_mode = #tpu.pipeline_mode<synchronous>, transform_indices = @transform_0, window_bounds = array<i64: 8, 32>}, {transform_indices = @transform_1, window_bounds = array<i64: 32, 128>}, {transform_indices = @transform_2, window_bounds = array<i64: 8, 128>}]} {
    %c0 = arith.constant 0 : index
    %c0_0 = arith.constant 0 : index
    %0 = vector.load %arg1[%c0, %c0_0] : memref<8x32xf32, #tpu.memory_space<vmem>>, vector<8x32xf32>
    %c0_1 = arith.constant 0 : index
    %c0_2 = arith.constant 0 : index
    %1 = vector.load %arg2[%c0_1, %c0_2] : memref<32x128xf32, #tpu.memory_space<vmem>>, vector<32x128xf32>
    %cst = arith.constant dense<0.000000e+00> : vector<8x128xf32>
    %2 = tpu.matmul %0, %1, %cst {dimension_numbers = #tpu.dot_dimension_numbers<[1], [0], [0], [1], [0, 0, 1, 1], [], []>} : vector<8x32xf32>, vector<32x128xf32>, vector<8x128xf32> -> vector<8x128xf32>
    %c0_3 = arith.constant 0 : index
    %c0_4 = arith.constant 0 : index
    %3 = vector.load %arg3[%c0_3, %c0_4] : memref<8x128xf32, #tpu.memory_space<vmem>>, vector<8x128xf32>
    tpu.vector_store %arg3[%c0_3, %c0_4], %2 {strides = array<i32>} : memref<8x128xf32, #tpu.memory_space<vmem>>, vector<8x128xf32>,
    return
  }
  func.func @transform_0(%arg0: i32) -> (i32, i32) {
    %c0_i32 = arith.constant 0 : i32
    %c0_i32_0 = arith.constant 0 : i32
    %c0_i32_1 = arith.constant 0 : i32
    return %c0_i32, %c0_i32_0 : i32, i32
  }
  func.func @transform_1(%arg0: i32) -> (i32, i32) {
    %c0_i32 = arith.constant 0 : i32
    %c0_i32_0 = arith.constant 0 : i32
    return %c0_i32, %arg0 : i32, i32
  }
  func.func @transform_2(%arg0: i32) -> (i32, i32) {
    %c0_i32 = arith.constant 0 : i32
    %c0_i32_0 = arith.constant 0 : i32
    return %c0_i32, %arg0 : i32, i32
  }
}

</mosaic_0001>

<bundles_post_ra>
// kernel: tpu_custom_call.1
= control target key start
LH: loop header
LB: loop body
LE: loop exit
PB: predicated region body
PF: predicated region fallthrough
CT: control target
= control target key end

     0   :  { %7 = vsyncpa [#allocation3], 0  ;;  %s203_s0 = inlined_call_operand.hbm [shape: f32[8,32], index: 0, kind: input, shape index: {}]   ;;  %s204_s1 = inlined_call_operand.hbm [shape: f32[32,128], index: 1, kind: input, shape index: {}]   ;;  %s205_s2 = inlined_call_operand.hbm [shape: f32[8,128], index: 2, kind: output, shape index: {}]  }
   0x1   :  { %8 = vsyncpa [#allocation6], 0 }
   0x2   :  { %9 = vsyncpa [#allocation4], 0  ;;  %s15_s11 = sshll.u32 %s203_s0, 4  ;;  %s174_s12 = smov [#allocation2]   ;;  %s16_s11 = int_to_ptr.hbm [resolvable:$true] %s15_s11 }
   0x3   :  { %s17_s13 = sshll.u32 %s174_s12, 4  ;;  %s25_s16 = sshll.u32 %s204_s1, 4  ;;  %s18_s13 = int_to_ptr.vmem [resolvable:$true] %s17_s13  ;;  %s26_s16 = int_to_ptr.hbm [resolvable:$true] %s25_s16 }
   0x4   :  { %20 = dma.hbm_to_vmem [thread:$0]  %s16_s11, 128, %s18_s13, [#allocation3]  }
   0x5   :  { %s175_s17 = smov [#allocation5]   ;;  %s176_s19 = smov 128  }
   0x6   :  { %s27_s18 = sshll.u32 %s175_s17, 4  ;;  %s177_s20 = smov 8   ;;  %s28_s18 = int_to_ptr.vmem [resolvable:$true] %s27_s18 }
   0x7   :  { %33 = dma.hbm_to_vmem [thread:$0]  %s26_s16, 512, %s28_s18, [#allocation6], %s176_s19, %s176_s19, %s177_s20  }
   0x8   :  { %168 = dma.done.wait [#allocation3], 128  }
   0x9   :  { %169 = vsyncadd [#allocation3], 4294967168 }
   0xa   :  { %170 = dma.done.wait [#allocation6], 512  }
   0xb   :  { %171 = vsyncadd [#allocation6], 4294966784  ;;  %v46_v0 = vld [vmem:[#allocation5 + $0x18] sm:$0xff]  ;;  %v45_v1 = vld [vmem:[#allocation5 + $0x10] sm:$0xff]  ;;  %vm47_vm0 = vcmask 261120   ;;  %s178_s0 = smov [#allocation7]  }
   0xc   :  { %63 = vmatpush.msra.mxu0 %v46_v0  ;;  %v44_v2 = vld [vmem:[#allocation5 + $0x8] sm:$0xff]  ;;  %v43_v3 = vld [vmem:[#allocation5] sm:$0xff]  ;;  %v42_v4 = vld [vmem:[#allocation2] sm:$0xff]  ;;  %s77_s1 = sshll.u32 %s178_s0, 4  ;;  %s79_s23 = sshll.u32 %s205_s2, 4  ;;  %s78_s1 = int_to_ptr.vmem [resolvable:$true] %s77_s1  ;;  %s80_s23 = int_to_ptr.hbm [resolvable:$true] %s79_s23 }
   0xe   :  { %64 = vmatpush.msra.mxu0 %v45_v1 }
  0x10   :  { %65 = vmatpush.msra.mxu0 %v44_v2 }
  0x12   :  { %66 = vmatpush.msra.mxu0 %v43_v3 }
  0x13   :  { %90 = vmatmul.msk.f32.vlgmr.msra.gmra.mxu0 %vm47_vm0, %v42_v4 }
  0x90   :  { %v68_v5 = vpop.f32.mrf.mxu0 }
  0x91   :  { %71 = vst [vmem:[#allocation7] sm:$0xff] %v68_v5 }
  0x92   :  { %82 = dma.vmem_to_hbm [thread:$0]  %s78_s1, 128, %s80_s23, [#allocation4]  }
  0x93   :  { %172 = dma.done.wait [#allocation4], 128  }
  0x94   :  { %173 = vsyncadd [#allocation4], 4294967168 }
  0x95   :  { %87 = vsyncpa [#allocation3], 1 }
  0x96   :  { %88 = vsyncpa [#allocation6], 1 }
  0x97   :  { %89 = vsyncpa [#allocation4], 1 }

</bundles_post_ra>
